<compile_context>
chip_gen: v7x
topology: tpu7x:2x2x1
jax: 0.10.0
libtpu: 0.0.40
codegen_flags: <defaults>
</compile_context>

<pallas_src>
import jax
import jax.numpy as jnp
from jax.experimental import pallas as pl
from jax.experimental.pallas import tpu as pltpu


def _pad_up(x: int, m: int) -> int:
    return ((x + m - 1) // m) * m


def _chip_vmem_params():
    """(embeddings block budget, scoped VMEM limit) selected per chip generation."""
    # Conservative defaults that also fit v7x's 64 MiB physical VMEM.
    block_budget = 8 * 1024 * 1024
    vmem_limit = 48 * 1024 * 1024
    try:
        info = pltpu.get_tpu_info()
        cap = getattr(info, "vmem_capacity_bytes", None)
        if cap is not None and cap >= 100 * 1024 * 1024:
            # v5e / v6e: 128 MiB physical VMEM -> spend it on bigger blocks /
            # fewer grid steps (0.35 us per-step overhead amortization).
            block_budget = 12 * 1024 * 1024
            vmem_limit = 96 * 1024 * 1024
    except Exception:
        pass  # unknown chip / query failed: keep the conservative defaults
    return block_budget, vmem_limit


def _choose_tiles(B: int, S: int, D_pad: int, itemsize: int, block_budget: int):
    """Pick (TB, TS, TD) for the (TB, TS, TD) embeddings block.

    Constraints honoured:
      * TD is a multiple of 128 that divides D_pad           (lane-dense, exact D tiling)
      * TS == S (whole sequence) or a multiple of 128        ((8,128) rules; S padded to TS)
      * TB == B (full batch) or a multiple of 8              (mask/out sublane alignment)
      * TB * TS * TD * itemsize <= block_budget               (bounded, double-bufferable)
    """
    nd = D_pad // 128
    td_cands = [128 * d for d in range(nd, 0, -1) if nd % d == 0]  # descending divisors

    TB = B if B <= 8 else 8

    if TB * S * 128 * itemsize <= block_budget:
        # Whole-sequence blocks: a single reduction step along S.
        TS = S
        TD = 128
        for cand in td_cands:
            if TB * S * cand * itemsize <= block_budget:
                TD = cand
                break
        # Grow TB with leftover budget (multiples of 8, or the full batch).
        max_rows = block_budget // (S * TD * itemsize)
        if max_rows >= B:
            TB = B
        else:
            TB = max(TB, (max_rows // 8) * 8)
    else:
        # Long sequences: floor TD at 128 and tile S (the "arbitrary" reduction axis),
        # bounding VMEM independently of S -- no block ever exceeds the budget.
        TD = 128
        ts_budget = block_budget // (TB * TD * itemsize)
        TS = max(128, (ts_budget // 128) * 128)

    # Guarantee >= 2 grid steps on a "parallel" axis so both v7x TensorCores get work
    # and the pipeline has something to prefetch.
    b_tiles = _pad_up(B, TB) // TB
    d_tiles = D_pad // TD
    if b_tiles == 1 and d_tiles == 1:
        if nd >= 2:
            for d in range(nd - 1, 0, -1):  # largest proper divisor -> >= 2 D tiles
                if nd % d == 0:
                    TD = 128 * d
                    break
        elif B >= 16:
            TB = max(8, ((B // 2) // 8) * 8)

    return TB, TS, TD


def mean_pool_kernel(emb_ref, mask_ref, out_ref, acc_ref, den_ref):
    # emb_ref:  (TB, TS, TD) block, native dtype (bf16/f32) - fed to the MXU as-is.
    # mask_ref: (TB, TS) block, float32.
    # out_ref:  (TB, TD) block, float32.
    # acc_ref:  (TB, TD) f32 accumulator (persists across the S grid axis).
    # den_ref:  (TB, 1)  f32 mask-count accumulator.
    si = pl.program_id(2)

    @pl.when(si == 0)
    def _():
        acc_ref[...] = jnp.zeros_like(acc_ref)
        den_ref[...] = jnp.zeros_like(den_ref)

    emb = emb_ref[...]                                   # (TB, TS, TD)
    m = mask_ref[...]                                    # (TB, TS), f32

    # Per-row valid-token count for this S tile (f32 accumulation).
    den_ref[...] += jnp.sum(m, axis=-1, keepdims=True)   # (TB, 1)

    # Weighted sum over the S tile on the MXU: (TB, 1, TS) @ (TB, TS, TD) -> (TB, 1, TD),
    # f32 accumulation regardless of the input dtype.  Mask values are 0/1 so the cast
    # to the embedding dtype is exact.
    w = m.astype(emb.dtype)[:, None, :]                  # (TB, 1, TS)
    acc_ref[...] += jnp.einsum(
        "bqs,bsd->bqd", w, emb, preferred_element_type=jnp.float32
    )[:, 0, :]                                           # (TB, TD)

    @pl.when(si == pl.num_programs(2) - 1)
    def _():
        # clamp(sum mask, 1e-9) applied to the *total* count, matching the reference.
        denom = jnp.maximum(den_ref[...], jnp.float32(1e-9))
        # Divide via reciprocal (EUP, exact mode) * multiply (VPU).
        out_ref[...] = (acc_ref[...] * pl.reciprocal(denom)).astype(out_ref.dtype)


def mean_pooling(token_embeddings: jax.Array, attention_mask: jax.Array,
                 *, block_budget: int | None = None) -> jax.Array:
    """Masked mean pooling. token_embeddings: (B, S, D), attention_mask: (B, S) -> (B, D)."""
    B, S, D = token_embeddings.shape
    itemsize = jnp.dtype(token_embeddings.dtype).itemsize

    chip_budget, vmem_limit = _chip_vmem_params()
    if block_budget is None:
        block_budget = chip_budget

    D_pad = _pad_up(D, 128)                              # lane-dense blocks / unmasked vst
    TB, TS, TD = _choose_tiles(B, S, D_pad, itemsize, block_budget)
    B_pad = _pad_up(B, TB)
    S_pad = _pad_up(S, TS)

    mask = attention_mask.astype(jnp.float32)            # (B, S); tiny vs. embeddings
    pad_b, pad_s, pad_d = B_pad - B, S_pad - S, D_pad - D
    if pad_b or pad_s or pad_d:
        # Zero padding: padded tokens have mask 0 (no contribution), padded rows give
        # clamped 0-vectors, padded D columns are 0 -- all sliced off below.
        token_embeddings = jnp.pad(
            token_embeddings, ((0, pad_b), (0, pad_s), (0, pad_d)))
    if pad_b or pad_s:
        mask = jnp.pad(mask, ((0, pad_b), (0, pad_s)))

    grid = (B_pad // TB, D_pad // TD, S_pad // TS)

    # VMEM sanity: 2 pipeline buffers per operand + scratch must fit the scoped limit.
    emb_blk = TB * TS * TD * itemsize
    mask_blk = _pad_up(TB, 8) * _pad_up(TS, 128) * 4
    out_blk = _pad_up(TB, 8) * TD * 4
    scratch_bytes = _pad_up(TB, 8) * TD * 4 + _pad_up(TB, 8) * 128 * 4
    vmem_needed = 2 * (emb_blk + mask_blk + out_blk) + scratch_bytes
    assert vmem_needed <= vmem_limit, (
        f"VMEM plan {vmem_needed} B exceeds scoped limit {vmem_limit} B "
        f"(TB={TB}, TS={TS}, TD={TD})")

    out = pl.pallas_call(
        mean_pool_kernel,
        out_shape=jax.ShapeDtypeStruct((B_pad, D_pad), jnp.float32),
        grid_spec=pltpu.PrefetchScalarGridSpec(
            num_scalar_prefetch=0,
            grid=grid,
            in_specs=[
                pl.BlockSpec((TB, TS, TD), lambda bi, di, si: (bi, si, di)),
                pl.BlockSpec((TB, TS), lambda bi, di, si: (bi, si)),
            ],
            out_specs=pl.BlockSpec((TB, TD), lambda bi, di, si: (bi, di)),
            scratch_shapes=[
                pltpu.VMEM((TB, TD), jnp.float32),       # pooled accumulator
                pltpu.VMEM((TB, 1), jnp.float32),        # mask-count accumulator
            ],
        ),
        compiler_params=pltpu.CompilerParams(
            # batch tiles / D tiles independent -> megacore sharding; S axis is the
            # accumulator reduction, iterated innermost.
            dimension_semantics=("parallel", "parallel", "arbitrary"),
            vmem_limit_bytes=vmem_limit,
        ),
        cost_estimate=pl.CostEstimate(
            flops=2 * B_pad * S_pad * D_pad,
            transcendentals=0,
            bytes_accessed=(B_pad * S_pad * D_pad * itemsize
                            + B_pad * S_pad * 4 + B_pad * D_pad * 4),
        ),
    )(token_embeddings, mask)

    return out[:B, :D]


def mean_pooling_reference(token_embeddings, attention_mask):
    m = attention_mask.astype(jnp.float32)                      # (B, S)
    denom = jnp.maximum(m.sum(axis=1, keepdims=True), 1e-9)     # (B, 1)
    w = m / denom                                               # (B, S)
    return jnp.einsum("bsd,bs->bd", token_embeddings.astype(jnp.float32), w,
                      precision="highest")


if __name__ == "__main__":
    # Small, deterministic example consistent with the module:
    # word_embedding_dimension = D = 32, batch B = 2, seq S = 8.
    B, S, D = 2, 8, 32
    key = jax.random.PRNGKey(0)
    k_emb, k_rest = jax.random.split(key)

    token_embeddings = jax.random.normal(k_emb, (B, S, D), dtype=jnp.float32)
    attention_mask = jnp.array(
        [[1, 1, 1, 1, 1, 0, 0, 0],
         [1, 1, 1, 1, 1, 1, 1, 0]],
        dtype=jnp.int32,
    )

    # f32 path.
    sentence_embedding = jax.block_until_ready(
        mean_pooling(token_embeddings, attention_mask)
    )
    ref = mean_pooling_reference(token_embeddings, attention_mask)
    assert sentence_embedding.shape == (B, D)
    assert jnp.allclose(sentence_embedding, ref, atol=1e-5, rtol=1e-5)

    # bf16 path: embeddings stay bf16 end-to-end (MXU takes bf16, f32 accumulation).
    emb_bf16 = token_embeddings.astype(jnp.bfloat16)
    out_bf16 = jax.block_until_ready(mean_pooling(emb_bf16, attention_mask))
    ref_bf16 = mean_pooling_reference(emb_bf16.astype(jnp.float32), attention_mask)
    assert jnp.allclose(out_bf16, ref_bf16, atol=1e-4, rtol=1e-4)

    # Exercise the S-reduction ("arbitrary") axis, D tiling and S/D padding by forcing
    # a tiny block budget (multi-step grid on a still-small problem).
    B2, S2, D2 = 4, 640, 256
    k2, _ = jax.random.split(k_rest)
    emb2 = jax.random.normal(k2, (B2, S2, D2), dtype=jnp.float32)
    lens = jnp.array([640, 500, 123, 1], dtype=jnp.int32)
    mask2 = (jnp.arange(S2)[None, :] < lens[:, None]).astype(jnp.int32)
    out2 = jax.block_until_ready(mean_pooling(emb2, mask2, block_budget=512 * 1024))
    ref2 = mean_pooling_reference(emb2, mask2)
    assert out2.shape == (B2, D2)
    assert jnp.allclose(out2, ref2, atol=1e-3, rtol=1e-3)

    print("KERNEL_OK")
</pallas_src>

<mosaic_0001>
module attributes {stable_mosaic.version = 11 : i64} {
  func.func @mean_pool_kernel(%arg0: i32, %arg1: i32, %arg2: i32, %arg3: memref<2x8x128xf32, #tpu.memory_space<vmem>>, %arg4: memref<2x8xf32, #tpu.memory_space<vmem>>, %arg5: memref<2x128xf32, #tpu.memory_space<vmem>>, %arg6: memref<2x128xf32, #tpu.memory_space<vmem>>, %arg7: memref<2x1xf32, #tpu.memory_space<vmem>>) attributes {dimension_semantics = [#tpu.dimension_semantics<parallel>, #tpu.dimension_semantics<parallel>, #tpu.dimension_semantics<arbitrary>], iteration_bounds = array<i64: 1, 1, 1>, scalar_prefetch = 0 : i64, scratch_operands = 2 : i64, tpu.core_type = #tpu.core_type<tc>, window_params = [{transform_indices = @transform_0, window_bounds = array<i64: 2, 8, 128>}, {transform_indices = @transform_1, window_bounds = array<i64: 2, 8>}, {transform_indices = @transform_2, window_bounds = array<i64: 2, 128>}]} {
    %c0_i32 = arith.constant 0 : i32
    %0 = arith.cmpi eq, %arg2, %c0_i32 : i32
    %1 = arith.extui %0 : i1 to i32
    %c0_i32_0 = arith.constant 0 : i32
    %2 = arith.cmpi ne, %1, %c0_i32_0 : i32
    scf.if %2 {
      %cst_16 = arith.constant 0.000000e+00 : f32
      %19 = vector.broadcast %cst_16 : f32 to vector<2x128xf32>
      %c0_17 = arith.constant 0 : index
      %c0_18 = arith.constant 0 : index
      %20 = vector.load %arg6[%c0_17, %c0_18] : memref<2x128xf32, #tpu.memory_space<vmem>>, vector<2x128xf32>
      tpu.vector_store %arg6[%c0_17, %c0_18], %19 {strides = array<i32>} : memref<2x128xf32, #tpu.memory_space<vmem>>, vector<2x128xf32>,
      %cst_19 = arith.constant 0.000000e+00 : f32
      %21 = vector.broadcast %cst_19 : f32 to vector<2x1xf32>
      %c0_20 = arith.constant 0 : index
      %c0_21 = arith.constant 0 : index
      %22 = vector.load %arg7[%c0_20, %c0_21] : memref<2x1xf32, #tpu.memory_space<vmem>>, vector<2x1xf32>
      tpu.vector_store %arg7[%c0_20, %c0_21], %21 {strides = array<i32>} : memref<2x1xf32, #tpu.memory_space<vmem>>, vector<2x1xf32>,
    } else {
    }
    %c0 = arith.constant 0 : index
    %c0_1 = arith.constant 0 : index
    %c0_2 = arith.constant 0 : index
    %3 = vector.load %arg3[%c0, %c0_1, %c0_2] : memref<2x8x128xf32, #tpu.memory_space<vmem>>, vector<2x8x128xf32>
    %c0_3 = arith.constant 0 : index
    %c0_4 = arith.constant 0 : index
    %4 = vector.load %arg4[%c0_3, %c0_4] : memref<2x8xf32, #tpu.memory_space<vmem>>, vector<2x8xf32>
    %c0_5 = arith.constant 0 : index
    %c0_6 = arith.constant 0 : index
    %5 = vector.load %arg7[%c0_5, %c0_6] : memref<2x1xf32, #tpu.memory_space<vmem>>, vector<2x1xf32>
    %cst = arith.constant dense<0.000000e+00> : vector<2xf32>
    %6 = vector.multi_reduction <add>, %4, %cst [1] : vector<2x8xf32> to vector<2xf32>
    %7 = vector.shape_cast %6 : vector<2xf32> to vector<2x1xf32>
    %8 = arith.addf %5, %7 : vector<2x1xf32>
    %c0_7 = arith.constant 0 : index
    %c0_8 = arith.constant 0 : index
    %9 = vector.load %arg7[%c0_7, %c0_8] : memref<2x1xf32, #tpu.memory_space<vmem>>, vector<2x1xf32>
    tpu.vector_store %arg7[%c0_7, %c0_8], %8 {strides = array<i32>} : memref<2x1xf32, #tpu.memory_space<vmem>>, vector<2x1xf32>,
    %10 = vector.shape_cast %4 : vector<2x8xf32> to vector<2x1x8xf32>
    %c0_9 = arith.constant 0 : index
    %c0_10 = arith.constant 0 : index
    %11 = vector.load %arg6[%c0_9, %c0_10] : memref<2x128xf32, #tpu.memory_space<vmem>>, vector<2x128xf32>
    "tpu.trace_start"() <{level = 10 : i32, message = "bqs,bsd->bqd"}> : () -> ()
    %cst_11 = arith.constant dense<0.000000e+00> : vector<2x1x128xf32>
    %12 = tpu.matmul %10, %3, %cst_11 {dimension_numbers = #tpu.dot_dimension_numbers<[2], [1], [1], [2], [0, 0, 0, 1, 1, 2], [0], [0]>} : vector<2x1x8xf32>, vector<2x8x128xf32>, vector<2x1x128xf32> -> vector<2x1x128xf32>
    "tpu.trace_stop"() : () -> ()
    %13 = vector.shape_cast %12 : vector<2x1x128xf32> to vector<2x128xf32>
    %14 = arith.addf %11, %13 : vector<2x128xf32>
    %c0_12 = arith.constant 0 : index
    %c0_13 = arith.constant 0 : index
    %15 = vector.load %arg6[%c0_12, %c0_13] : memref<2x128xf32, #tpu.memory_space<vmem>>, vector<2x128xf32>
    tpu.vector_store %arg6[%c0_12, %c0_13], %14 {strides = array<i32>} : memref<2x128xf32, #tpu.memory_space<vmem>>, vector<2x128xf32>,
    %c0_i32_14 = arith.constant 0 : i32
    %16 = arith.cmpi eq, %arg2, %c0_i32_14 : i32
    %17 = arith.extui %16 : i1 to i32
    %c0_i32_15 = arith.constant 0 : i32
    %18 = arith.cmpi ne, %17, %c0_i32_15 : i32
    scf.if %18 {
      %c0_16 = arith.constant 0 : index
      %c0_17 = arith.constant 0 : index
      %19 = vector.load %arg7[%c0_16, %c0_17] : memref<2x1xf32, #tpu.memory_space<vmem>>, vector<2x1xf32>
      %cst_18 = arith.constant 9.99999971E-10 : f32
      %20 = vector.broadcast %cst_18 : f32 to vector<2x1xf32>
      %21 = arith.maximumf %19, %20 : vector<2x1xf32>
      %c0_19 = arith.constant 0 : index
      %c0_20 = arith.constant 0 : index
      %22 = vector.load %arg6[%c0_19, %c0_20] : memref<2x128xf32, #tpu.memory_space<vmem>>, vector<2x128xf32>
      %23 = tpu.reciprocal %21 : vector<2x1xf32> -> vector<2x1xf32>
      %24 = vector.broadcast %23 : vector<2x1xf32> to vector<2x128xf32>
      %25 = arith.mulf %22, %24 : vector<2x128xf32>
      %c0_21 = arith.constant 0 : index
      %c0_22 = arith.constant 0 : index
      %26 = vector.load %arg5[%c0_21, %c0_22] : memref<2x128xf32, #tpu.memory_space<vmem>>, vector<2x128xf32>
      tpu.vector_store %arg5[%c0_21, %c0_22], %25 {strides = array<i32>} : memref<2x128xf32, #tpu.memory_space<vmem>>, vector<2x128xf32>,
    } else {
    }
    return
  }
  func.func @transform_0(%arg0: i32, %arg1: i32, %arg2: i32) -> (i32, i32, i32) {
    %c0_i32 = arith.constant 0 : i32
    return %arg0, %arg2, %arg1 : i32, i32, i32
  }
  func.func @transform_1(%arg0: i32, %arg1: i32, %arg2: i32) -> (i32, i32) {
    %c0_i32 = arith.constant 0 : i32
    return %arg0, %arg2 : i32, i32
  }
  func.func @transform_2(%arg0: i32, %arg1: i32, %arg2: i32) -> (i32, i32) {
    %c0_i32 = arith.constant 0 : i32
    return %arg0, %arg1 : i32, i32
  }
}

</mosaic_0001>

<bundles_post_ra>
// kernel: tpu_custom_call.1
= control target key start
LH: loop header
LB: loop body
LE: loop exit
PB: predicated region body
PF: predicated region fallthrough
CT: control target
= control target key end

     0   :  { %7 = vsyncpa [#allocation5], 0  ;;  %s377_s0 = inlined_call_operand.hbm [shape: f32[2,8,128], index: 0, kind: input, shape index: {}]   ;;  %s378_s1 = inlined_call_operand.vmem [shape: f32[2,8], index: 1, kind: input, shape index: {}]   ;;  %s379_s2 = inlined_call_operand.hbm [shape: f32[2,128], index: 2, kind: output, shape index: {}]  }
   0x1   :  { %8 = vsyncpa [#allocation6], 0  ;;  %s325_s9 = smov [#allocation4]   ;;  %s277_s13 = scalar_lea.hbm %s377_s0, 256 }
   0x2   :  { %s14_s10 = sshll.u32 %s325_s9, 4  ;;  %p278_p0 = scmp.ne.s32.totalorder %s377_s0, %s277_s13  ;;  %s15_s10 = int_to_ptr.vmem [resolvable:$true] %s14_s10 }
   0x3   :  { %p281_p1 = scmp.lt.u32.totalorder %s277_s13, %s377_s0 }
   0x5   :  { %p283_p2 = pnand %p281_p1, %p278_p0 }
   0x7   :  { %286 = shalt.err (!%p283_p2)
}
   0x8   :  { %s287_s18 = scalar_lea.vmem %s15_s10, 256  ;;  %p292_p4 = scmp.lt.s32.totalorder %s15_s10, %s15_s10 }
   0x9   :  { %p288_p3 = scmp.ne.s32.totalorder %s15_s10, %s287_s18  ;;  %p293_p5 = scmp.lt.s32.totalorder %s287_s18, %s287_s18 }
   0xb   :  { %p294_p6 = por %p293_p5, %p292_p4 }
   0xd   :  { %p295_p7 = pnand %p294_p6, %p288_p3 }
   0xf   :  { %298 = shalt.err (!%p295_p7)
}
  0x10   :  { %s326_s19 = smov 128   ;;  %s327_s20 = smov 8  }
  0x11   :  { %20 = dma.hbm_to_vmem [thread:$0]  %s377_s0, 256, %s15_s10, [#allocation5], %s326_s19, %s326_s19, %s327_s20  }
  0x12   :  { %321 = dma.done.wait [#allocation5], 256  }
  0x13   :  { %322 = vsyncadd [#allocation5], 4294967040  ;;  %v48_v0 = vlaneseq  ;;  %v328_v1 = vmov 1966171168   ;;  %v329_v3 = vmov 0.0   ;;  %vm31_vm0 = vcmask 1024  }
  0x14   :  { %v46_v2 = vunpack.c.l.s4 %v328_v1  ;;  %261 = vmatprep.subr.mxu1 %v329_v3  ;;  %30 = vst [vmem:[#allocation2] sm:$0x3] %v329_v3  ;;  %256 = vmatprep.subr.mxu0 %v329_v3  ;;  %vm330_vm1 = vmmov 0   ;;  %32 = vst.msk [vmem:[#allocation3] sm:$0x3] %vm31_vm0, %v329_v3  ;;  %vm37_vm2 = vcmask 58368  }
  0x15   :  { %v49_v4 = vshrl.u32 %v48_v0, 7  ;;  %263 = vmatprep.mubr.msk.f32.mxu1 %vm330_vm1, %v329_v3  ;;  %258 = vmatprep.mubr.msk.f32.mxu0 %vm330_vm1, %v329_v3  ;;  %v35_v7 = vld [vmem:[%s378_s1] sm:$0x3]  ;;  %v34_v8 = vld [vmem:[#allocation4 + $0x8] sm:$0xff]  ;;  %v33_v9 = vld [vmem:[#allocation4] sm:$0xff]  ;;  %vm68_vm3 = vcmask 64512  }
  0x16   :  { %v47_v5 = vunpack.c.0.s8 %v46_v2  ;;  %v38_v10 = vsel %vm37_vm2, %v35_v7, 0.0  ;;  %262 = vmatpush3.msra.mxu1 %v34_v8  ;;  %257 = vmatpush3.msra.mxu0 %v33_v9  ;;  %v331_v15 = vmov 0   ;;  %vm216_vm4 = vcmask 1041409   ;;  %s332_s1 = smov [#allocation7]  }
  0x17   :  { %39 = vadd.xlane.f32.xlu0 %v38_v10  ;;  %s241_s24 = sshll.u32 %s332_s1, 4  ;;  %s242_s24 = int_to_ptr.vmem [resolvable:$true] %s241_s24 }
  0x18   :  { %v50_v6 = vsub.s32 %v47_v5, %v49_v4  ;;  %274 = vset.pattern.permute.xlu0 %v331_v15  ;;  %s299_s25 = scalar_lea.vmem %s242_s24, 32  ;;  %p304_p9 = scmp.lt.s32.totalorder %s242_s24, %s242_s24 }
  0x19   :  { %p300_p8 = scmp.ne.s32.totalorder %s242_s24, %s299_s25  ;;  %p305_p10 = scmp.lt.s32.totalorder %s299_s25, %s299_s25 }
  0x1a   :  { %v51_v11 = vrot.slane %v35_v7, %v50_v6 }
  0x1b   :  { %v36_v16 = vld [vmem:[#allocation3] sm:$0x3]  ;;  %v67_v27 = vld [vmem:[#allocation2] sm:$0x3]  ;;  %p306_p11 = por %p305_p10, %p304_p9 }
  0x1c   :  { %v52_v12 = vcombine.high %v51_v11, %v51_v11  ;;  %v59_v13 = vrot.slane %v51_v11, %v50_v6 }
  0x1d   :  { %p307_p12 = pnand %p306_p11, %p300_p8 }
  0x1e   :  { %v66_v14 = vrot.slane %v52_v12, %v50_v6  ;;  %259 = vmatmul.mubr.msk.f32.vlgmr.msra.gmra.mrb[0].mxu0 %vm68_vm3, %v59_v13 }
  0x20   :  { %264 = vmatmul.mubr.msk.f32.vlgmr.msra.gmra.mrb[0].mxu1 %vm68_vm3, %v66_v14 }
  0xa4   :  { %v40_v17 = vpop.xlane.xlu0 %39 }
  0xa5   :  { %v41_v18 = vadd.f32 %v40_v17, %v36_v16 }
  0xa7   :  { %43 = vst.msk [vmem:[#allocation3] sm:$0x3] %vm31_vm0, %v41_v18 }
  0xae   :  { %v224_v19 = vld [vmem:[#allocation3] sm:$0x3] }
  0xaf   :  { %v225_v20 = vmax.f32 %v224_v19, 1e-09 }
  0xb1   :  { %275 = vrcp.f32 %v225_v20 }
  0xbb   :  { %v276_v21 = vpop.eup %275 }
  0xbc   :  { %230 = vperm.xlu0 %274, %v276_v21  }
  0xf1   :  { %v137_v22 = vpop.f32.mrb[0].mxu0 }
  0xf2   :  { %v260_v23 = vpop.f32.mrb[1].mxu0 }
  0xf3   :  { %v209_v24 = vpop.f32.mrb[0].mxu1 }
  0xf4   :  { %v215_v25 = vrot.slane %v209_v24, 7  ;;  %v265_v26 = vpop.f32.mrb[1].mxu1 }
  0xf6   :  { %v217_v28 = vsel %vm216_vm4, %v215_v25, %v137_v22 }
  0xf7   :  { %v219_v29 = vadd.f32 %v217_v28, %v67_v27 }
  0xf9   :  { %220 = vst [vmem:[#allocation2] sm:$0x3] %v219_v29 }
 0x100   :  { %v226_v30 = vld [vmem:[#allocation2] sm:$0x3] }
 0x13b   :  { %v231_v31 = vpop.permute.xlu0 %230 }
 0x13c   :  { %v233_v32 = vmul.f32 %v231_v31, %v226_v30 }
 0x13e   :  { %234 = vst [vmem:[#allocation7] sm:$0x3] %v233_v32 }
 0x13f   :  { %310 = shalt.err (!%p307_p12)
}
 0x140   :  { %s311_s28 = scalar_lea.hbm %s379_s2, 32 }
 0x141   :  { %p312_p13 = scmp.ne.s32.totalorder %s379_s2, %s311_s28  ;;  %p315_p0 = scmp.lt.u32.totalorder %s311_s28, %s379_s2 }
 0x143   :  { %p317_p1 = pnand %p315_p0, %p312_p13 }
 0x145   :  { %320 = shalt.err (!%p317_p1)
}
 0x146   :  { %244 = dma.vmem_to_hbm [thread:$0]  %s242_s24, 32, %s379_s2, [#allocation6]  }
 0x147   :  { %323 = dma.done.wait [#allocation6], 32  }
 0x148   :  { %324 = vsyncadd [#allocation6], 4294967264 }
 0x149   :  { %248 = vsyncpa [#allocation5], 1 }
 0x14a   :  { %249 = vsyncpa [#allocation6], 1 }

</bundles_post_ra>
